<compile_context>
chip_gen: v7x
topology: tpu7x:2x2x1
jax: 0.10.0
libtpu: 0.0.40
codegen_flags: <defaults>
</compile_context>

<pallas_src>
import math

import jax
import jax.numpy as jnp
from jax.experimental import pallas as pl
from jax.experimental.pallas import tpu as pltpu


def _round_up(x, m):
    return ((x + m - 1) // m) * m


def _fused_deembed(x_t, w_slab, b_slab, xmod_blk, wcol_blk, ocol_blk,
                   total_out_pad, tn, out_dtype=None):
    """Fused per-mod de-embedding.

    x_t:      (n_sel, B, D)         activations, mod-major (already permuted)
    w_slab:   (D, W_total)          all mods' weights packed into one column slab
    b_slab:   (1, W_total) or None  packed biases (f32)
    xmod_blk: (n_tiles,) int32      mod (position in x_t) for each column tile
    wcol_blk: (n_tiles,) int32      column-block index into w_slab / b_slab
    ocol_blk: (n_tiles,) int32      column-block index into the output slab
    returns:  (B, total_out_pad) where, for tile j,
              out[:, oc*tn:(oc+1)*tn] = x_t[xm] @ w_slab[:, wc*tn:(wc+1)*tn] (+ b)
    """
    n_sel, B, D = x_t.shape
    n_tiles = int(xmod_blk.shape[0])
    use_bias = b_slab is not None
    out_dtype = x_t.dtype if out_dtype is None else out_dtype

    x_item = jnp.dtype(x_t.dtype).itemsize
    w_item = jnp.dtype(w_slab.dtype).itemsize
    o_item = jnp.dtype(out_dtype).itemsize

    # ---- batch tile + full VMEM budget (x + w + bias + out double-buffers) ---
    def vmem_need(tb_):
        need = 2 * (tb_ * D * x_item + D * tn * w_item + tb_ * tn * o_item)
        if use_bias:
            need += 2 * tn * 4
        return need

    tb = B if B <= 256 else 256
    # Shrink the batch tile (never the lane-dense column tile) if over budget.
    while tb > 8 and tb % 16 == 0 and vmem_need(tb) > (40 << 20):
        tb //= 2
    vmem_limit = int(min(max(vmem_need(tb) + (4 << 20), 16 << 20), 64 << 20))

    # Column-tile axis OUTER so the weight block index is constant along the
    # inner batch axis -> each weight tile is fetched from HBM exactly once.
    grid = (n_tiles, pl.cdiv(B, tb))

    if use_bias:
        def kernel(xm_ref, wc_ref, oc_ref, x_ref, w_ref, b_ref, o_ref):
            xv = x_ref[0]                       # (tb, D), contiguous load
            if xv.dtype != w_ref.dtype:
                xv = xv.astype(w_ref.dtype)
            acc = jnp.dot(xv, w_ref[...], preferred_element_type=jnp.float32)
            acc = acc + b_ref[...]
            o_ref[...] = acc.astype(o_ref.dtype)
    else:
        def kernel(xm_ref, wc_ref, oc_ref, x_ref, w_ref, o_ref):
            xv = x_ref[0]
            if xv.dtype != w_ref.dtype:
                xv = xv.astype(w_ref.dtype)
            acc = jnp.dot(xv, w_ref[...], preferred_element_type=jnp.float32)
            o_ref[...] = acc.astype(o_ref.dtype)

    in_specs = [
        # x: one (tb, D) slice of the scalar-prefetched mod index.
        pl.BlockSpec((1, tb, D), lambda ci, bi, xm, wc, oc: (xm[ci], bi, 0)),
        # weight slab: one (D, tn) column tile; resident across the inner axis.
        pl.BlockSpec((D, tn), lambda ci, bi, xm, wc, oc: (0, wc[ci])),
    ]
    args = [x_t, w_slab]
    if use_bias:
        in_specs.append(
            pl.BlockSpec((1, tn), lambda ci, bi, xm, wc, oc: (0, wc[ci])))
        args.append(b_slab)

    out_specs = pl.BlockSpec((tb, tn), lambda ci, bi, xm, wc, oc: (bi, oc[ci]))

    bytes_accessed = (
        x_t.size * x_item                         # activations
        + n_tiles * D * tn * w_item               # selected weight tiles (once)
        + (n_tiles * tn * 4 if use_bias else 0)   # selected bias tiles
        + B * total_out_pad * o_item              # output writeback
    )
    cost = pl.CostEstimate(
        flops=2 * B * D * n_tiles * tn,
        transcendentals=0,
        bytes_accessed=bytes_accessed,
    )

    return pl.pallas_call(
        kernel,
        out_shape=jax.ShapeDtypeStruct((B, total_out_pad), out_dtype),
        grid_spec=pltpu.PrefetchScalarGridSpec(
            num_scalar_prefetch=3,
            grid=grid,
            in_specs=in_specs,
            out_specs=out_specs,
        ),
        compiler_params=pltpu.CompilerParams(
            dimension_semantics=("parallel", "parallel"),
            vmem_limit_bytes=vmem_limit,
        ),
        cost_estimate=cost,
    )(xmod_blk, wcol_blk, ocol_blk, *args)


class ModDeEmbedPallas:
    """Mod-to-mod de-embedding: one Linear(embed_dim -> size) per modality,
    all selected modalities evaluated in a single fused Pallas kernel."""

    def __init__(self, sizes, embed_dim=768, bias=True, key=None,
                 param_dtype=jnp.bfloat16, out_dtype=None):
        self.sizes = list(sizes)
        self.embed_dim = int(embed_dim)
        self.use_bias = bool(bias)
        self.param_dtype = param_dtype
        self.out_dtype = out_dtype
        if key is None:
            key = jax.random.PRNGKey(0)

        # ---- raw per-mod parameters (PyTorch Linear init, weight transposed) ---
        self.weights = []   # per-mod (D, size)
        self.biases = []    # per-mod (size,)
        bound = 1.0 / math.sqrt(self.embed_dim)
        for size in self.sizes:
            key, kw, kb = jax.random.split(key, 3)
            w = jax.random.uniform(kw, (self.embed_dim, size), jnp.float32,
                                   minval=-bound, maxval=bound)
            b = (jax.random.uniform(kb, (size,), jnp.float32,
                                    minval=-bound, maxval=bound)
                 if self.use_bias else jnp.zeros((size,), jnp.float32))
            self.weights.append(w)
            self.biases.append(b)

        # ---- column-tile width (per-mod padding granularity) -------------------
        # Largest of {512, 256, 128} whose per-mod padding waste stays <= 25% over
        # minimal 128-aligned packing and whose double-buffered weight tile is
        # modest (so tn never has to shrink for VMEM).
        w_item = jnp.dtype(param_dtype).itemsize
        base = sum(_round_up(s, 128) for s in self.sizes)
        tn = 128
        for cand in (256, 512):
            tot = sum(_round_up(s, cand) for s in self.sizes)
            if tot <= int(1.25 * base) and 2 * self.embed_dim * cand * w_item <= (12 << 20):
                tn = cand
        self.tn = tn

        # ---- packed, lane-dense parameter slab (zero padding per mod) ----------
        self.pad_sizes = [_round_up(s, tn) for s in self.sizes]
        self.col_off = []        # element offset of each mod in the slab
        self.col_blk_off = []    # column-block (tile) offset of each mod
        off = 0
        for p in self.pad_sizes:
            self.col_off.append(off)
            self.col_blk_off.append(off // tn)
            off += p
        total = off
        w_slab = jnp.zeros((self.embed_dim, total), param_dtype)
        b_slab = jnp.zeros((1, total), jnp.float32)
        for m, size in enumerate(self.sizes):
            w_slab = w_slab.at[:, self.col_off[m]:self.col_off[m] + size].set(
                self.weights[m].astype(param_dtype))
            b_slab = b_slab.at[0, self.col_off[m]:self.col_off[m] + size].set(
                self.biases[m])
        self._w_slab = w_slab
        self._b_slab = b_slab if self.use_bias else None

    def __call__(self, x_mod, i=()):
        # x_mod: (batch, n_mods_in, embed_dim). PyTorch permutes to
        # (n_mods, batch, D) and applies proj[i[k]] to the k-th mod slice.
        i = list(i)
        if len(i) == 0:
            i = list(range(x_mod.shape[1]))
        n_sel = len(i)

        # One cheap wrapper transpose of the small activation; the kernel then
        # selects each mod as a leading-axis block (no in-kernel sublane gather).
        x_t = jnp.transpose(x_mod[:, :n_sel, :], (1, 0, 2))  # (n_sel, B, D)

        # Static (Python) tile schedule -> scalar-prefetch arrays. Weight column
        # blocks index directly into the full slab, so subsets need no jnp.take.
        xmod_blk, wcol_blk, ocol_blk = [], [], []
        out_elem_off, out_blocks = [], 0
        for k, mod in enumerate(i):
            nt = self.pad_sizes[mod] // self.tn
            out_elem_off.append(out_blocks * self.tn)
            for t in range(nt):
                xmod_blk.append(k)
                wcol_blk.append(self.col_blk_off[mod] + t)
                ocol_blk.append(out_blocks + t)
            out_blocks += nt
        total_out_pad = out_blocks * self.tn

        out = _fused_deembed(
            x_t, self._w_slab, self._b_slab,
            jnp.asarray(xmod_blk, jnp.int32),
            jnp.asarray(wcol_blk, jnp.int32),
            jnp.asarray(ocol_blk, jnp.int32),
            total_out_pad, self.tn, out_dtype=self.out_dtype,
        )  # (B, total_out_pad)

        # Strip per-mod lane padding (pure slicing in the wrapper).
        return [out[:, out_elem_off[k]: out_elem_off[k] + self.sizes[mod]]
                for k, mod in enumerate(i)]


if __name__ == "__main__":
    key = jax.random.PRNGKey(0)
    batch = 8
    embed_dim = 64
    sizes = [16, 24, 48, 160]      # 160 spans two 128-wide column tiles
    n_mods = len(sizes)

    key, kx, kp = jax.random.split(key, 3)
    x_mod = jax.random.normal(kx, (batch, n_mods, embed_dim), jnp.float32)

    # f32 parameters: strict check against the PyTorch-equivalent reference.
    model_f32 = ModDeEmbedPallas(sizes, embed_dim=embed_dim, bias=True, key=kp,
                                 param_dtype=jnp.float32)
    # bf16 parameters (default): halves weight DMA; looser tolerance.
    model_bf16 = ModDeEmbedPallas(sizes, embed_dim=embed_dim, bias=True, key=kp)

    outs = [jax.block_until_ready(o) for o in model_f32(x_mod)]
    sub = [3, 0]
    outs_sub = [jax.block_until_ready(o) for o in model_f32(x_mod, i=sub)]
    outs_bf = [jax.block_until_ready(o) for o in model_bf16(x_mod)]

    # Reference in plain JAX (same semantics as the PyTorch forward).
    x_t = jnp.transpose(x_mod, (1, 0, 2))
    ok = True
    for m in range(n_mods):
        ref = x_t[m] @ model_f32.weights[m] + model_f32.biases[m][None, :]
        ok &= bool(jnp.allclose(outs[m], ref, atol=1e-5, rtol=1e-5))
        ok &= outs[m].shape == (batch, sizes[m])
    for k, m in enumerate(sub):
        ref = x_t[k] @ model_f32.weights[m] + model_f32.biases[m][None, :]
        ok &= bool(jnp.allclose(outs_sub[k], ref, atol=1e-5, rtol=1e-5))
        ok &= outs_sub[k].shape == (batch, sizes[m])
    for m in range(n_mods):
        # bf16 path: compare against a reference with bf16-rounded inputs
        # (MXU keeps the f32 accumulation).
        wb = model_bf16.weights[m].astype(jnp.bfloat16).astype(jnp.float32)
        xb = x_t[m].astype(jnp.bfloat16).astype(jnp.float32)
        ref = xb @ wb + model_bf16.biases[m][None, :]
        ok &= bool(jnp.allclose(outs_bf[m], ref, atol=1e-2, rtol=1e-2))
        ok &= outs_bf[m].shape == (batch, sizes[m])

    if ok:
        print("KERNEL_OK")
    else:
        raise SystemExit("mismatch between Pallas kernel and reference")
</pallas_src>

<mosaic_0001>
module attributes {stable_mosaic.version = 11 : i64} {
  func.func @kernel(%arg0: i32, %arg1: i32, %arg2: memref<5xi32, #tpu.memory_space<smem>>, %arg3: memref<5xi32, #tpu.memory_space<smem>>, %arg4: memref<5xi32, #tpu.memory_space<smem>>, %arg5: memref<1x8x64xf32, #tpu.memory_space<vmem>>, %arg6: memref<64x128xf32, #tpu.memory_space<vmem>>, %arg7: memref<1x128xf32, #tpu.memory_space<vmem>>, %arg8: memref<8x128xf32, #tpu.memory_space<vmem>>) attributes {dimension_semantics = [#tpu.dimension_semantics<parallel>, #tpu.dimension_semantics<parallel>], iteration_bounds = array<i64: 5, 1>, scalar_prefetch = 3 : i64, scratch_operands = 0 : i64, tpu.core_type = #tpu.core_type<tc>, window_params = [{transform_indices = @transform_0, window_bounds = array<i64: 1, 8, 64>}, {transform_indices = @transform_1, window_bounds = array<i64: 64, 128>}, {transform_indices = @transform_2, window_bounds = array<i64: 1, 128>}, {transform_indices = @transform_3, window_bounds = array<i64: 8, 128>}]} {
    %c0 = arith.constant 0 : index
    %c0_0 = arith.constant 0 : index
    %c0_1 = arith.constant 0 : index
    %0 = vector.load %arg5[%c0, %c0_0, %c0_1] : memref<1x8x64xf32, #tpu.memory_space<vmem>>, vector<1x8x64xf32>
    %1 = vector.shape_cast %0 : vector<1x8x64xf32> to vector<8x64xf32>
    %c0_2 = arith.constant 0 : index
    %c0_3 = arith.constant 0 : index
    %2 = vector.load %arg6[%c0_2, %c0_3] : memref<64x128xf32, #tpu.memory_space<vmem>>, vector<64x128xf32>
    %cst = arith.constant dense<0.000000e+00> : vector<8x128xf32>
    %3 = tpu.matmul %1, %2, %cst {dimension_numbers = #tpu.dot_dimension_numbers<[1], [0], [0], [1], [0, 0, 1, 1], [], []>} : vector<8x64xf32>, vector<64x128xf32>, vector<8x128xf32> -> vector<8x128xf32>
    %c0_4 = arith.constant 0 : index
    %c0_5 = arith.constant 0 : index
    %4 = vector.load %arg7[%c0_4, %c0_5] : memref<1x128xf32, #tpu.memory_space<vmem>>, vector<1x128xf32>
    %5 = vector.broadcast %4 : vector<1x128xf32> to vector<8x128xf32>
    %6 = arith.addf %3, %5 : vector<8x128xf32>
    %c0_6 = arith.constant 0 : index
    %c0_7 = arith.constant 0 : index
    %7 = vector.load %arg8[%c0_6, %c0_7] : memref<8x128xf32, #tpu.memory_space<vmem>>, vector<8x128xf32>
    tpu.vector_store %arg8[%c0_6, %c0_7], %6 {strides = array<i32>} : memref<8x128xf32, #tpu.memory_space<vmem>>, vector<8x128xf32>,
    return
  }
  func.func @transform_0(%arg0: i32, %arg1: i32, %arg2: memref<5xi32, #tpu.memory_space<smem>>, %arg3: memref<5xi32, #tpu.memory_space<smem>>, %arg4: memref<5xi32, #tpu.memory_space<smem>>) -> (i32, i32, i32) {
    %0 = arith.index_cast %arg0 : i32 to index
    %1 = memref.load %arg2[%0] : memref<5xi32, #tpu.memory_space<smem>>
    %c0_i32 = arith.constant 0 : i32
    %c0_i32_0 = arith.constant 0 : i32
    return %1, %arg1, %c0_i32 : i32, i32, i32
  }
  func.func @transform_1(%arg0: i32, %arg1: i32, %arg2: memref<5xi32, #tpu.memory_space<smem>>, %arg3: memref<5xi32, #tpu.memory_space<smem>>, %arg4: memref<5xi32, #tpu.memory_space<smem>>) -> (i32, i32) {
    %0 = arith.index_cast %arg0 : i32 to index
    %1 = memref.load %arg3[%0] : memref<5xi32, #tpu.memory_space<smem>>
    %c0_i32 = arith.constant 0 : i32
    %c0_i32_0 = arith.constant 0 : i32
    return %c0_i32, %1 : i32, i32
  }
  func.func @transform_2(%arg0: i32, %arg1: i32, %arg2: memref<5xi32, #tpu.memory_space<smem>>, %arg3: memref<5xi32, #tpu.memory_space<smem>>, %arg4: memref<5xi32, #tpu.memory_space<smem>>) -> (i32, i32) {
    %0 = arith.index_cast %arg0 : i32 to index
    %1 = memref.load %arg3[%0] : memref<5xi32, #tpu.memory_space<smem>>
    %c0_i32 = arith.constant 0 : i32
    %c0_i32_0 = arith.constant 0 : i32
    return %c0_i32, %1 : i32, i32
  }
  func.func @transform_3(%arg0: i32, %arg1: i32, %arg2: memref<5xi32, #tpu.memory_space<smem>>, %arg3: memref<5xi32, #tpu.memory_space<smem>>, %arg4: memref<5xi32, #tpu.memory_space<smem>>) -> (i32, i32) {
    %0 = arith.index_cast %arg0 : i32 to index
    %1 = memref.load %arg4[%0] : memref<5xi32, #tpu.memory_space<smem>>
    %c0_i32 = arith.constant 0 : i32
    return %arg1, %1 : i32, i32
  }
}

</mosaic_0001>

<bundles_post_ra>
// kernel: tpu_custom_call.1
= control target key start
LH: loop header
LB: loop body
LE: loop exit
PB: predicated region body
PF: predicated region fallthrough
CT: control target
= control target key end

     0   :  { %s1335_s0 = inlined_call_operand.hbm [shape: s32[5], index: 0, kind: input, shape index: {}]   ;;  %s1336_s3 = inlined_call_operand.hbm [shape: f32[4,8,64], index: 3, kind: input, shape index: {}]   ;;  %s1337_s4 = inlined_call_operand.hbm [shape: f32[64,640], index: 4, kind: input, shape index: {}]   ;;  %s1338_s5 = inlined_call_operand.vmem [shape: f32[1,640], index: 5, kind: input, shape index: {}]   ;;  %s1339_s6 = inlined_call_operand.hbm [shape: f32[8,640], index: 6, kind: output, shape index: {}]   ;;  %s1340_s1 = inlined_call_operand.vmem [shape: s32[5], index: 1, kind: input, shape index: {}]   ;;  %s1341_s2 = inlined_call_operand.vmem [shape: s32[5], index: 2, kind: input, shape index: {}]  }
   0x1   :  { %s702_s23 = scalar_lea.hbm %s1335_s0, 16 }
   0x2   :  { %p703_p0 = scmp.ne.s32.totalorder %s1335_s0, %s702_s23  ;;  %p706_p1 = scmp.lt.u32.totalorder %s702_s23, %s1335_s0 }
   0x4   :  { %p708_p2 = pnand %p706_p1, %p703_p0 }
   0x6   :  { %711 = shalt.err (!%p708_p2)  }
   0x7   :  { %s934_s28 = smov [#allocation3]   ;;  %s13_s9 = sshll.u32 %s1340_s1, 4  ;;  %s14_s9 = int_to_ptr.vmem [resolvable:$true] %s13_s9 }
   0x8   :  { %12 = dma.hbm_to_smem %s1335_s0, 16, %s934_s28, [#allocation2] }
   0x9   :  { %s17_s12 = sshll.u32 %s1341_s2, 4  ;;  %s712_s13 = scalar_lea.vmem %s14_s9, 16  ;;  %s18_s12 = int_to_ptr.vmem [resolvable:$true] %s17_s12 }
   0xa   :  { %p713_p3 = scmp.ne.s32.totalorder %s14_s9, %s712_s13  ;;  %p717_p4 = scmp.lt.s32.totalorder %s14_s9, %s14_s9 }
   0xb   :  { %p718_p5 = scmp.lt.s32.totalorder %s712_s13, %s712_s13 }
   0xd   :  { %p719_p6 = por %p718_p5, %p717_p4 }
   0xf   :  { %p720_p7 = pnand %p719_p6, %p713_p3 }
  0x11   :  { %723 = shalt.err (!%p720_p7)  }
  0x12   :  { %s935_s14 = smov [#allocation4]   ;;  %s724_s0 = scalar_lea.vmem %s18_s12, 16 }
  0x13   :  { %16 = dma.vmem_to_smem %s14_s9, 16, %s935_s14, [#allocation2] }
  0x14   :  { %p725_p8 = scmp.ne.s32.totalorder %s18_s12, %s724_s0  ;;  %p729_p9 = scmp.lt.s32.totalorder %s18_s12, %s18_s12 }
  0x15   :  { %p730_p10 = scmp.lt.s32.totalorder %s724_s0, %s724_s0 }
  0x17   :  { %p731_p11 = por %p730_p10, %p729_p9 }
  0x19   :  { %p732_p12 = pnand %p731_p11, %p725_p8 }
  0x1b   :  { %735 = shalt.err (!%p732_p12)  }
  0x1c   :  { %s936_s1 = smov [#allocation5]  }
  0x1d   :  { %20 = dma.vmem_to_smem %s18_s12, 16, %s936_s1, [#allocation2] }
  0x1e   :  { %872 = dma.done.wait [#allocation2], 48 }
  0x1f   :  { %873 = vsyncadd [#allocation2], 4294967248 }
  0x20   :  { %22 = sfence }
  0x21   :  { %23 = vsyncpa [#allocation7], 0 }
  0x22   :  { %25 = vsyncpa [#allocation7 + $0x1], 0 }
  0x23   :  { %26 = vsyncpa [#allocation10], 0 }
  0x24   :  { %28 = vsyncpa [#allocation10 + $0x1], 0 }
  0x25   :  { %29 = vsyncpa [#allocation8], 0 }
  0x26   :  { %31 = vsyncpa [#allocation8 + $0x1], 0  ;;  %s999_s2 = smov 0   ;;  %s1001_s15 = smov 0  }
  0x27   :  { %s1003_s16 = smov 0   ;;  %s1005_s17 = smov 0  }
  0x28   :  { %s1007_s18 = smov 0   ;;  %s1009_s19 = smov 0  }
  0x29   :  { %s1011_s20 = smov 0   ;;  %s1013_s21 = smov 0  }
  0x2a   :  { %s1015_s22 = smov 0   ;;  %s1017_s23 = smov 0  }
  0x2b   :  { %s1019_s24 = smov 0   ;;  %s1021_s25 = smov 0  }
  0x2c LB: > { %1353 = sst [smem:[#allocation21_spill]] %s896_s16  ;;  %s1342_s26 = sadd.s32 4294967295, %s932_s25   ;;  %s932_s25 = sphi %s1021_s25, %s37_s25   ;;  %s928_s24 = sphi %s1019_s24, %s1395_s24   ;;  %s924_s23 = sphi %s1017_s23, %s1394_s23   ;;  %s920_s22 = sphi %s1015_s22, %s1385_s22   ;;  %s916_s21 = sphi %s1013_s21, %s1393_s21   ;;  %s912_s20 = sphi %s1011_s20, %s1392_s20   ;;  %s908_s19 = sphi %s1009_s19, %s1391_s19   ;;  %s904_s18 = sphi %s1007_s18, %s1390_s18   ;;  %s900_s17 = sphi %s1005_s17, %s1389_s17   ;;  %s896_s16 = sphi %s1003_s16, %s1382_s16   ;;  %s892_s15 = sphi %s1001_s15, %s1388_s15   ;;  %s888_s2 = sphi %s999_s2, %s1387_s2  }
  0x2d   : > { %1354 = sst [smem:[#allocation22_spill]] %s920_s22  ;;  %s49_s27 = sadd.s32 1, %s928_s24 }
  0x2e   : > { %p51_p13 = scmp.ge.s32.totalorder %s49_s27, 5  ;;  %s53_s29 = sld [smem:[#allocation3 + %s928_s24]] }
  0x2f   : > { %p67_p0 = scmp.ne.s32.totalorder %s920_s22, %s916_s21  ;;  %p68_p1 = scmp.eq.s32.totalorder %s932_s25, 0 }
  0x30   : > { %s1397_s27 = smov (%p51_p13, %s49_s27), 0  ;;  %p73_p2 = scmp.ne.s32.totalorder %s916_s21, %s912_s20 }
  0x31   : > { %1355 = sst [smem:[#allocation23_spill]] %s1397_s27  ;;  %p74_p3 = scmp.eq.s32.totalorder %s1342_s26, 0 }
  0x32   : > { %s54_s30 = sld [smem:[#allocation3 + %s1397_s27]]  ;;  %s60_s9 = sadd.s32 1, %s920_s22 }
  0x33   : > { %s83_s7 = sld [smem:[#allocation4 + %s928_s24]]  ;;  %p1071_p4 = por %p74_p3, %p73_p2 }
  0x34   : > { %s84_s8 = sld [smem:[#allocation4 + %s1397_s27]]  ;;  %p1077_p5 = por %p68_p1, %p67_p0 }
  0x35   : > { %s1356_s10 = scalar_select %p1071_p4, 1, 0 }
  0x36   : > { %p101_p6 = scmp.ne.s32.totalorder %s904_s18, %s900_s17  ;;  %s139_s12 = sld [smem:[#allocation5 + %s928_s24]] }
  0x37   : > { %s140_s13 = sld [smem:[#allocation5 + %s1397_s27]]  ;;  %s88_s14 = sadd.s32 1, %s908_s19 }
  0x38   : > { %p1085_p7 = por %p101_p6, %p74_p3  ;;  %s55_s1 = ssub.s32 %s53_s29, %s54_s30 }
  0x39   : > { %s146_s20 = sadd.s32 1, %s896_s16  ;;  %p58_p8 = scmp.eq.s32.totalorder %s55_s1, 0 }
  0x3a   : > { %s1358_s0 = scalar_select %p1085_p7, 1, 0 }
  0x3b   : > { %s85_s28 = ssub.s32 %s83_s7, %s84_s8  ;;  %p156_p10 = scmp.ne.s32.totalorder %s896_s16, %s892_s15 }
  0x3c   : > { %p86_p9 = scmp.eq.s32.totalorder %s85_s28, 0  ;;  %s1361_s30 = sadd.s32 4294967295, %s932_s25  }
  0x3d   : > { %s1093_s17 = scalar_select %p58_p8, %s920_s22, %s60_s9  }
  0x3e   : > { %s1096_s26 = scalar_select %p86_p9, %s908_s19, %s88_s14  }
  0x3f   : > { %1359 = sst [smem:[#allocation24_spill]] %s1093_s17  ;;  %s142_s29 = ssub.s32 %s139_s12, %s140_s13 }
  0x40   : > { %1360 = sst [smem:[#allocation25_spill]] %s1096_s26  ;;  %p157_p11 = scmp.eq.s32.totalorder %s1361_s30, 4 }
  0x41   : > { %p144_p12 = scmp.eq.s32.totalorder %s142_s29, 0  ;;  %p162_p13 = scmp.ne.s32.totalorder %s892_s15, %s888_s2 }
  0x42   : > { %p1102_p0 = por %p157_p11, %p156_p10  ;;  %s1363_s7 = sadd.s32 4294967294, %s932_s25  }
  0x43   : > { %p163_p2 = scmp.eq.s32.totalorder %s1363_s7, 4  ;;  %p1348_p6 = scmp.lt.s32.totalorder %s932_s25, 5 }
  0x44   : > { %s1362_s28 = scalar_select %p1102_p0, 1, 0 }
  0x45   : > { %s1109_s8 = scalar_select %p144_p12, %s896_s16, %s146_s20  }
  0x46   : > { %p1111_p3 = por %p163_p2, %p162_p13  ;;  %s183_s12 = sand.u32 1, %s920_s22  }
  0x47   : > { %1364 = sst [smem:[#allocation26_spill]] %s1109_s8  ;;  %p95_p8 = scmp.ne.s32.totalorder %s908_s19, %s904_s18 }
  0x48   : > { %s1365_s9 = scalar_select %p1111_p3, 1, 0 }
  0x49   : > { %s514_s13 = sshll.u32 %s183_s12, 3  ;;  %p1123_p9 = pnand %p1348_p6, %p1077_p5 }
  0x4a   : > { %1366 = sst [smem:[#allocation27_spill]] %s1365_s9  ;;  %p1138_p10 = por %p95_p8, %p68_p1 }
  0x4b   : > { %s568_s1 = scalar_select %p1077_p5, [#allocation3], [#allocation12] }
  0x4c   : > { %s569_s20 = scalar_select %p1077_p5, %s928_s24, 0 }
  0x4d   : > { %s1399_s1 = smov (!%p1348_p6, %s568_s1), [#allocation15]  ;;  %s187_s7 = scalar_lea.vmem [#allocation6], %s514_s13 }
  0x4e   : > { %s1401_s20 = smov (!%p1348_p6, %s569_s20), 0  ;;  %s196_s27 = sshll.u32 %s187_s7, 4  ;;  %s1161_s27 = int_to_ptr.vmem [resolvable:$true] %s196_s27 }
  0x4f   : > { %s188_s30 = sld [smem:[%s1399_s1 + %s1401_s20]]  ;;  %p1146_p11 = pnand %p1348_p6, %p1138_p10 }
  0x50   : > { %p518_p5 = scmp.ge.s32.totalorder %s932_s25, 1  ;;  %p230_p12 = scmp.lt.s32.totalorder %s932_s25, 6 }
  0x51   : > { %s1369_s11 = scalar_select %p1146_p11, 1, 0 }
  0x52   : > { %s1346_s17 = sand.u32 1, %s908_s19   ;;  %p1153_p13 = pnand %p518_p5, %p230_p12 }
  0x53   : > { %s1159_s26 = sshll.u32 %s1346_s17, 6  ;;  %s184_s8 = scalar_lea.sflag [#allocation7], %s183_s12 }
  0x54   : > { %s1370_s22 = scalar_select %p1153_p13, 1, 0 }
  0x55   : > { %s515_s13 = sshll.u32 %s188_s30, 7  ;;  %p738_p2 = pneg %p1123_p9 }
  0x56   : > { %s1166_s7 = scalar_lea.hbm %s1336_s3, %s515_s13  ;;  %s741_s9 = scalar_lea.hbm %s1336_s3, 512 }
  0x57   : > { %s736_s16 = scalar_lea.hbm %s1166_s7, 128  ;;  %p742_p12 = scmp.lt.u32.totalorder %s1166_s7, %s1336_s3 }
  0x58   : > { %p737_p1 = scmp.ne.s32.totalorder %s1166_s7, %s736_s16  ;;  %p743_p6 = scmp.lt.u32.totalorder %s741_s9, %s736_s16 }
  0x59   : > { %p745_p0 = scmp.lt.u32.totalorder %s736_s16, %s1166_s7 }
  0x5a   : > { %p739_p8 = pnand %p738_p2, %p737_p1  ;;  %p744_p3 = por %p743_p6, %p742_p12 }
  0x5c   : > { %p740_p5 = pneg %p739_p8  ;;  %p746_p7 = por %p745_p0, %p744_p3 }
  0x5e   : > { %p747_p4 = pnand %p746_p7, %p740_p5 }
  0x60   : > { %750 = shalt.err (!%p747_p4)
}
  0x61   : > { %s751_s12 = scalar_lea.vmem %s1161_s27, 128  ;;  %s937_s17 = smov [#allocation6]  }
  0x62   : > { %p752_p1 = scmp.ne.s32.totalorder %s1161_s27, %s751_s12  ;;  %s756_s20 = sshll.u32 %s937_s17, 4  ;;  %s757_s20 = int_to_ptr.vmem [resolvable:$false] %s756_s20 }
  0x63   : > { %s758_s30 = scalar_lea.vmem %s757_s20, 256  ;;  %p759_p11 = scmp.lt.s32.totalorder %s1161_s27, %s757_s20 }
  0x64   : > { %p754_p8 = pnand %p752_p1, %p738_p2  ;;  %p760_p6 = scmp.lt.s32.totalorder %s758_s30, %s751_s12 }
  0x66   : > { %p755_p13 = pneg %p754_p8  ;;  %p761_p12 = por %p760_p6, %p759_p11 }
  0x68   : > { %p762_p0 = pnand %p761_p12, %p755_p13 }
  0x6a   : > { %765 = shalt.err (!%p762_p0)
}
  0x6b   : > { %585 = dma.hbm_to_vmem [thread:$0]  (!%p1123_p9), %s1166_s7, 128, %s1161_s27, %s184_s8  }
  0x6c   : > { %s571_s16 = scalar_select %p1138_p10, [#allocation4], [#allocation13] }
  0x6d   : > { %s572_s9 = scalar_select %p1138_p10, %s928_s24, 0 }
  0x6e   : > { %p1371_p4 = scmp.lt.s32.totalorder %s932_s25, 5  ;;  %s207_s1 = scalar_lea.vmem [#allocation9], %s1159_s26 }
  0x6f   : > { %s214_s13 = sshll.u32 %s207_s1, 4  ;;  %s1373_s27 = sand.u32 1, %s908_s19   ;;  %s1203_s13 = int_to_ptr.vmem [resolvable:$true] %s214_s13 }
  0x70   : > { %s1403_s16 = smov (!%p1371_p4, %s571_s16), [#allocation16]  ;;  %p1372_p7 = pmov %p1371_p4 }
  0x71   : > { %s1212_s8 = scalar_lea.sflag [#allocation10], %s1373_s27  ;;  %p1374_p9 = scmp.ne.s32.totalorder %s1369_s11, 0 }
  0x72   : > { %s1405_s9 = smov (!%p1372_p7, %s572_s9), 0 }
  0x73   : > { %s208_s14 = sld [smem:[%s1403_s16 + %s1405_s9]]  ;;  %p768_p10 = pneg %p1374_p9 }
  0x74   : > { %s771_s16 = scalar_lea.hbm %s1337_s4, 5120 }
  0x79   : > { %s517_s12 = sshll.u32 %s208_s14, 7 }
  0x7a   : > { %s1208_s30 = scalar_lea.hbm %s1337_s4, %s517_s12 }
  0x7b   : > { %s766_s29 = scalar_lea.hbm %s1208_s30, 1024  ;;  %p772_p2 = scmp.lt.u32.totalorder %s1208_s30, %s1337_s4 }
  0x7c   : > { %p767_p3 = scmp.ne.s32.totalorder %s1208_s30, %s766_s29  ;;  %p773_p5 = scmp.lt.u32.totalorder %s771_s16, %s766_s29 }
  0x7d   : > { %p775_p8 = scmp.lt.u32.totalorder %s766_s29, %s1208_s30 }
  0x7e   : > { %p769_p11 = pnand %p768_p10, %p767_p3  ;;  %p774_p1 = por %p773_p5, %p772_p2 }
  0x80   : > { %p770_p13 = pneg %p769_p11  ;;  %p776_p6 = por %p775_p8, %p774_p1 }
  0x82   : > { %p777_p12 = pnand %p776_p6, %p770_p13 }
  0x84   : > { %780 = shalt.err (!%p777_p12)
}
  0x85   : > { %s781_s1 = scalar_lea.vmem %s1203_s13, 1024  ;;  %s938_s12 = smov [#allocation9]  }
  0x86   : > { %p782_p0 = scmp.ne.s32.totalorder %s1203_s13, %s781_s1  ;;  %s786_s17 = sshll.u32 %s938_s12, 4  ;;  %s787_s17 = int_to_ptr.vmem [resolvable:$false] %s786_s17 }
  0x87   : > { %s788_s20 = scalar_lea.vmem %s787_s17, 2048  ;;  %p789_p3 = scmp.lt.s32.totalorder %s1203_s13, %s787_s17 }
  0x88   : > { %p784_p4 = pnand %p782_p0, %p768_p10  ;;  %p790_p11 = scmp.lt.s32.totalorder %s788_s20, %s781_s1 }
  0x8a   : > { %p785_p7 = pneg %p784_p4  ;;  %p791_p2 = por %p790_p11, %p789_p3 }
  0x8c   : > { %p792_p5 = pnand %p791_p2, %p785_p7 }
  0x8e   : > { %795 = shalt.err (!%p792_p5)
}
  0x8f   : > { %s939_s27 = smov 640   ;;  %s940_s29 = smov 128  }
  0x90   : > { %s941_s26 = smov 8   ;;  %p1375_p10 = scmp.ne.s32.totalorder %s1370_s22, 0 }
  0x91   : > { %590 = dma.hbm_to_vmem [thread:$0]  (!%p1374_p9), %s1208_s30, 1024, %s1203_s13, %s1212_s8, %s939_s27, %s940_s29, %s941_s26  }
  0x92   : > { %234 = sbr.rel (%p1375_p10) target bundleno = 404 (0x194), region = 32  ;;  %s236_s7 = sand.u32 (!%p1375_p10), 1, %s916_s21  }
  0x93   : > { %s1243_s16 = sshll.u32 (!%p1375_p10), %s236_s7, 3  ;;  %s237_s9 = scalar_lea.sflag (!%p1375_p10), [#allocation7], %s236_s7 }
  0x94   : > { %s240_s14 = scalar_lea.vmem (!%p1375_p10), [#allocation6], %s1243_s16  ;;  %p1376_p13 = scmp.ne.s32.totalorder (!%p1375_p10), %s1356_s10, 0 }
  0x99   : > { %875 = dma.done.wait (%p1376_p13), %s237_s9, 128  }
  0x9a   : > { %877 = vsyncadd (%p1376_p13), %s237_s9, 4294967168  ;;  %s245_s11 = sand.u32 1, %s904_s18   ;;  %p1377_p9 = scmp.ne.s32.totalorder %s1358_s0, 0 }
  0x9b   : > { %s520_s13 = sshll.u32 %s245_s11, 6  ;;  %s246_s30 = scalar_lea.sflag [#allocation10], %s245_s11 }
  0x9c   : > { %s249_s22 = scalar_lea.vmem [#allocation9], %s520_s13 }
  0x9d   : > { %879 = dma.done.wait (%p1377_p9), %s246_s30, 1024  }
  0x9e   : > { %881 = vsyncadd (%p1377_p9), %s246_s30, 4294966272  ;;  %v942_v0 = vmov 0.0|0.0   ;;  %vm943_vm0 = vmmov 0   ;;  %v944_v1 = vmov 0.0   ;;  %v290_v2 = vld [vmem:[%s249_s22] sm:$0xff]  ;;  %v291_v3 = vld [vmem:[%s249_s22 + $0x8] sm:$0xff] }
  0x9f   : > { %556 = vmatprep.subr.bf16.mxu0 %v942_v0  ;;  %553 = vmatprep.mubr.msk.f32.mxu0 %vm943_vm0, %v944_v1  ;;  %v292_v4 = vld [vmem:[%s249_s22 + $0x10] sm:$0xff]  ;;  %v557_v5 = vpack.c.bf16 %v291_v3, %v290_v2  ;;  %v293_v6 = vld [vmem:[%s249_s22 + $0x18] sm:$0xff]  ;;  %v294_v8 = vld [vmem:[%s249_s22 + $0x20] sm:$0xff]  ;;  %vm305_vm1 = vcmask 523264   ;;  %s283_s10 = sld [smem:[#allocation4 + %s924_s23]]  ;;  %p1378_p1 = scmp.ne.s32.totalorder %s1362_s28, 0 }
  0xa0   : > { %v560_v7 = vpack.c.bf16 %v293_v6, %v292_v4  ;;  %v295_v9 = vld [vmem:[%s249_s22 + $0x28] sm:$0xff]  ;;  %v296_v11 = vld [vmem:[%s249_s22 + $0x30] sm:$0xff]  ;;  %v297_v12 = vld [vmem:[%s249_s22 + $0x38] sm:$0xff]  ;;  %s278_s8 = sand.u32 1, %s892_s15   ;;  %s945_s13 = smov [#allocation11]  }
  0xa1   : > { %558 = vmatpush3.bf16.msra.mxu0 %v557_v5  ;;  %v563_v10 = vpack.c.bf16 %v295_v9, %v294_v8  ;;  %v566_v13 = vpack.c.bf16 %v297_v12, %v296_v11  ;;  %v289_v14 = vld [vmem:[%s240_s14] sm:$0xff]  ;;  %s576_s0 = scalar_select %p1378_p1, [#allocation5], [#allocation14] }
  0xa2   : > { %559 = vmatprep.subr.bf16.mxu0 %v942_v0  ;;  %s1407_s23 = smov (!%p1378_p1, %s924_s23), 0  ;;  %s521_s12 = sshll.u32 %s278_s8, 3 }
  0xa3   : > { %s388_s1 = sld [smem:[%s576_s0 + %s1407_s23]]  ;;  %s280_s26 = scalar_lea.vmem [#allocation11], %s521_s12 }
  0xa4   : > { %s397_s7 = sshll.u32 %s280_s26, 4  ;;  %s381_s23 = scalar_lea.sflag [#allocation8], %s278_s8  ;;  %s1272_s7 = int_to_ptr.vmem [resolvable:$true] %s397_s7 }
  0xa5   : > { %561 = vmatpush3.bf16.msra.mxu0 %v560_v7  ;;  %p284_p8 = scmp.lt.s32.totalorder %s283_s10, 4  ;;  %s796_s11 = scalar_lea.vmem %s1272_s7, 128 }
  0xa6   : > { %562 = vmatprep.subr.bf16.mxu0 %v942_v0  ;;  %p797_p6 = scmp.ne.s32.totalorder %s1272_s7, %s796_s11  ;;  %s800_s30 = sshll.u32 %s945_s13, 4  ;;  %s801_s30 = int_to_ptr.vmem [resolvable:$false] %s800_s30 }
  0xa7   : > { %s1409_s10 = smov (!%p284_p8, %s283_s10), 4  ;;  %s802_s22 = scalar_lea.vmem %s801_s30, 256 }
  0xa8   : > { %s286_s27 = scalar_lea.vmem %s1338_s5, %s1409_s10  ;;  %p798_p12 = pnand %p797_p6, %p1378_p1 }
  0xa9   : > { %564 = vmatpush3.bf16.msra.mxu0 %v563_v10  ;;  %v522_v15 = vld [vmem:[%s286_s27] ss:$0 sm:$0xff]  ;;  %s525_s29 = sshll.u32 %s388_s1, 7  ;;  %p803_p4 = scmp.lt.s32.totalorder %s1272_s7, %s801_s30 }
  0xaa   : > { %565 = vmatprep.subr.bf16.mxu0 %v942_v0  ;;  %s1270_s14 = scalar_lea.hbm %s1339_s6, %s525_s29  ;;  %p799_p0 = pneg %p798_p12 }
  0xab   : > { %p804_p7 = scmp.lt.s32.totalorder %s802_s22, %s796_s11 }
  0xad   : > { %567 = vmatpush3.bf16.msra.mxu0 %v566_v13  ;;  %p805_p3 = por %p804_p7, %p803_p4 }
  0xaf   : > { %p806_p11 = pnand %p805_p3, %p799_p0 }
  0xb0   : > { %554 = vmatmul.mubr.msk.f32.vlgmr.msra.gmra.mrb[0].mxu0 %vm305_vm1, %v289_v14 }
 0x183   : > { %v375_v16 = vpop.f32.mrb[0].mxu0 }
 0x184   : > { %v376_v17 = vadd.f32 %v522_v15, %v375_v16  ;;  %v555_v18 = vpop.f32.mrb[1].mxu0 }
 0x186   : > { %379 = vst [vmem:[%s280_s26] sm:$0xff] %v376_v17 }
 0x187   : > { %809 = shalt.err (!%p806_p11)
}
 0x188   : > { %s810_s10 = scalar_lea.hbm %s1270_s14, 128  ;;  %s814_s1 = scalar_lea.hbm %s1339_s6, 640 }
 0x189   : > { %p811_p2 = scmp.ne.s32.totalorder %s1270_s14, %s810_s10  ;;  %p815_p13 = scmp.lt.u32.totalorder %s1270_s14, %s1339_s6 }
 0x18a   : > { %p816_p9 = scmp.lt.u32.totalorder %s814_s1, %s810_s10  ;;  %p818_p6 = scmp.lt.u32.totalorder %s810_s10, %s1270_s14 }
 0x18b   : > { %p812_p5 = pnand %p811_p2, %p1378_p1 }
 0x18c   : > { %p817_p8 = por %p816_p9, %p815_p13 }
 0x18d   : > { %p813_p10 = pneg %p812_p5 }
 0x18e   : > { %p819_p12 = por %p818_p6, %p817_p8 }
 0x190   : > { %p820_p0 = pnand %p819_p12, %p813_p10 }
 0x192   : > { %823 = shalt.err (!%p820_p0)
}
 0x193   : > { %578 = dma.vmem_to_hbm [thread:$0]  (%p1378_p1), %s1272_s7, 128, %s1270_s14, %s381_s23  }
 0x194 PF: > { %s1379_s20 = sld [smem:[#allocation27_spill]]  ;;  %p596_p4 = scmp.ge.s32.totalorder %s932_s25, 2 }
 0x195   : > { %s409_s27 = sand.u32 1, %s888_s2  }
 0x196   : > { %s410_s29 = scalar_lea.sflag [#allocation8], %s409_s27 }
 0x19a   : > { %p1380_p7 = scmp.ne.s32.totalorder %s1379_s20, 0 }
 0x19c   : > { %p592_p3 = pnand %p596_p4, %p1380_p7 }
 0x19e   : > { %883 = dma.done.wait (!%p592_p3), %s410_s29, 128  }
 0x19f   : > { %885 = vsyncadd (!%p592_p3), %s410_s29, 4294967168  ;;  %s37_s25 = sadd.s32 1, %s932_s25   ;;  %s1381_s26 = sld [smem:[#allocation21_spill]] }
 0x1a0   : > { %p34_p11 = scmp.ge.s32.totalorder %s37_s25, 7   ;;  %s1382_s16 = sld [smem:[#allocation26_spill]] }
 0x1a1   : > { %s1383_s28 = sld [smem:[#allocation25_spill]]  ;;  %s1384_s7 = sld [smem:[#allocation22_spill]] }
 0x1a2   : > { %s1385_s22 = sld [smem:[#allocation24_spill]]  ;;  %s1386_s9 = sld [smem:[#allocation23_spill]] }
 0x1a3   : > { %s1387_s2 = smov %s892_s15  ;;  %s1389_s17 = smov %s904_s18 }
 0x1a4   : > { %s1390_s18 = smov %s908_s19  ;;  %s1392_s20 = smov %s916_s21 }
 0x1a5   : > { %s1388_s15 = smov %s1381_s26  ;;  %s1394_s23 = smov %s928_s24 }
 0x1a6   :  { %36 = sbr.rel (!%p34_p11) target bundleno = 44 (0x2c), region = 93 }
 0x1a7   : > { %s1391_s19 = smov %s1383_s28  ;;  %s1393_s21 = smov %s1384_s7 }
 0x1a8   : > { %s1395_s24 = smov %s1386_s9 }
 0x1ad   :  { %415 = vsyncpa [#allocation7], 1 }
 0x1ae   :  { %417 = vsyncpa [#allocation7 + $0x1], 1 }
 0x1af   :  { %418 = vsyncpa [#allocation10], 1 }
 0x1b0   :  { %420 = vsyncpa [#allocation10 + $0x1], 1 }
 0x1b1   :  { %421 = vsyncpa [#allocation8], 1 }
 0x1b2   :  { %423 = vsyncpa [#allocation8 + $0x1], 1 }

</bundles_post_ra>
